<compile_context>
chip_gen: v6e
topology: v6e:2x2x1
jax: 0.10.0
libtpu: 0.0.40
codegen_flags: <defaults>
</compile_context>

<pallas_src>
import jax
import jax.numpy as jnp
from jax.experimental import pallas as pl
from jax.experimental.pallas import tpu as pltpu


def _critic_kernel(s_ref, a_ref, w1s_ref, w1a_ref, b123_ref,
                   w2_ref, w3_ref, w4_ref, b4_ref, o_ref):
    # Layer 1: fused concat -> two small MXU dots accumulating into one f32 tile.
    h = (jnp.dot(s_ref[...], w1s_ref[...], preferred_element_type=jnp.float32)
         + jnp.dot(a_ref[...], w1a_ref[...], preferred_element_type=jnp.float32)
         + b123_ref[0:1, :])
    h = jnp.maximum(h, 0.0)

    # Layer 2
    h = jnp.dot(h, w2_ref[...], preferred_element_type=jnp.float32) + b123_ref[1:2, :]
    h = jnp.maximum(h, 0.0)

    # Layer 3
    h = jnp.dot(h, w3_ref[...], preferred_element_type=jnp.float32) + b123_ref[2:3, :]
    h = jnp.maximum(h, 0.0)

    # Layer 4 (H -> 1): lane reduction instead of a width-1 MXU matmul.
    q = jnp.sum(h * w4_ref[...], axis=-1, keepdims=True) + b4_ref[...]
    o_ref[...] = q.astype(o_ref.dtype)


def pack_params(params, n_states):
    """One-time parameter repack for the kernel (done outside the hot path)."""
    (w1, b1), (w2, b2), (w3, b3), (w4, b4) = params
    w1s = w1[:n_states, :]                          # (n_states, H)
    w1a = w1[n_states:, :]                          # (action_dim, H)
    b123 = jnp.concatenate([b1, b2, b3], axis=0)    # (3, H)
    w4row = w4.T                                    # (1, H)
    return (w1s, w1a, b123, w2, w3, w4row, b4)      # b4: (1, 1)


def critic_forward(state, action, packed_params, *, block_b=512):
    """state: (B, n_states), action: (B, action_dim) -> Q: (B, 1)."""
    w1s, w1a, b123, w2, w3, w4row, b4 = packed_params
    B, n_states = state.shape
    action_dim = action.shape[1]

    # Batch tile: whole batch if it fits, otherwise a multiple-of-8 tile.
    if B <= block_b:
        tb = B
    else:
        tb = block_b  # 512, divisible by 8
    grid = (pl.cdiv(B, tb),)

    in_specs = [
        pl.BlockSpec((tb, n_states), lambda i: (i, 0)),      # state tile
        pl.BlockSpec((tb, action_dim), lambda i: (i, 0)),    # action tile
        pl.BlockSpec(w1s.shape, lambda i: (0, 0)),           # weights stay resident
        pl.BlockSpec(w1a.shape, lambda i: (0, 0)),
        pl.BlockSpec(b123.shape, lambda i: (0, 0)),
        pl.BlockSpec(w2.shape, lambda i: (0, 0)),
        pl.BlockSpec(w3.shape, lambda i: (0, 0)),
        pl.BlockSpec(w4row.shape, lambda i: (0, 0)),
        pl.BlockSpec(b4.shape, lambda i: (0, 0)),
    ]
    out_specs = pl.BlockSpec((tb, 1), lambda i: (i, 0))

    return pl.pallas_call(
        _critic_kernel,
        out_shape=jax.ShapeDtypeStruct((B, 1), jnp.float32),
        grid=grid,
        in_specs=in_specs,
        out_specs=out_specs,
        compiler_params=pltpu.CompilerParams(
            dimension_semantics=("parallel",)),   # lets v7x shard batch tiles over 2 TCs
    )(state, action, w1s, w1a, b123, w2, w3, w4row, b4)


def init_params(key, n_states, action_dim, hidden2):
    """Deterministic init mimicking PyTorch nn.Linear default (U[-1/sqrt(fan_in), +])."""
    dims = [(n_states + action_dim, hidden2),
            (hidden2, hidden2),
            (hidden2, hidden2),
            (hidden2, 1)]
    params = []
    for (fan_in, fan_out) in dims:
        key, kw, kb = jax.random.split(key, 3)
        bound = 1.0 / jnp.sqrt(fan_in)
        # stored as (in_features, out_features) so the kernel does x @ W
        w = jax.random.uniform(kw, (fan_in, fan_out), jnp.float32, -bound, bound)
        b = jax.random.uniform(kb, (1, fan_out), jnp.float32, -bound, bound)
        params.append((w, b))
    return params


def critic_reference(state, action, params):
    x = jnp.concatenate([state, action], axis=1).astype(jnp.float32)
    (w1, b1), (w2, b2), (w3, b3), (w4, b4) = params
    h = jnp.maximum(x @ w1 + b1, 0.0)
    h = jnp.maximum(h @ w2 + b2, 0.0)
    h = jnp.maximum(h @ w3 + b3, 0.0)
    return h @ w4 + b4


if __name__ == "__main__":
    # Pendulum-v1: observation dim = 3, action dim = 1.  H=32 as in the module;
    # note H=32 uses only 32 of 128 vreg lanes — an algorithmic choice kept as-is.
    n_states, action_dim, hidden2 = 3, 1, 32
    batch = 8

    key = jax.random.PRNGKey(0)
    k_s, k_a, k_p = jax.random.split(key, 3)
    state = jax.random.normal(k_s, (batch, n_states), jnp.float32)
    action = jax.random.normal(k_a, (batch, action_dim), jnp.float32)
    params = init_params(k_p, n_states, action_dim, hidden2)
    packed = pack_params(params, n_states)

    q = critic_forward(state, action, packed)
    q = jax.block_until_ready(q)

    q_ref = critic_reference(state, action, params)
    assert q.shape == (batch, 1)
    assert jnp.allclose(q, q_ref, atol=1e-4, rtol=1e-4), "mismatch vs reference"

    print("KERNEL_OK")
</pallas_src>

<mosaic_0001>
module attributes {stable_mosaic.version = 11 : i64} {
  func.func @_critic_kernel(%arg0: i32, %arg1: memref<8x3xf32, #tpu.memory_space<vmem>>, %arg2: memref<8x1xf32, #tpu.memory_space<vmem>>, %arg3: memref<3x32xf32, #tpu.memory_space<vmem>>, %arg4: memref<1x32xf32, #tpu.memory_space<vmem>>, %arg5: memref<3x32xf32, #tpu.memory_space<vmem>>, %arg6: memref<32x32xf32, #tpu.memory_space<vmem>>, %arg7: memref<32x32xf32, #tpu.memory_space<vmem>>, %arg8: memref<1x32xf32, #tpu.memory_space<vmem>>, %arg9: memref<1x1xf32, #tpu.memory_space<vmem>>, %arg10: memref<8x1xf32, #tpu.memory_space<vmem>>) attributes {dimension_semantics = [#tpu.dimension_semantics<parallel>], iteration_bounds = array<i64: 1>, scalar_prefetch = 0 : i64, scratch_operands = 0 : i64, tpu.core_type = #tpu.core_type<tc>, window_params = [{transform_indices = @transform_0, window_bounds = array<i64: 8, 3>}, {transform_indices = @transform_1, window_bounds = array<i64: 8, 1>}, {pipeline_mode = #tpu.pipeline_mode<synchronous>, transform_indices = @transform_2, window_bounds = array<i64: 3, 32>}, {pipeline_mode = #tpu.pipeline_mode<synchronous>, transform_indices = @transform_3, window_bounds = array<i64: 1, 32>}, {pipeline_mode = #tpu.pipeline_mode<synchronous>, transform_indices = @transform_4, window_bounds = array<i64: 3, 32>}, {pipeline_mode = #tpu.pipeline_mode<synchronous>, transform_indices = @transform_5, window_bounds = array<i64: 32, 32>}, {pipeline_mode = #tpu.pipeline_mode<synchronous>, transform_indices = @transform_6, window_bounds = array<i64: 32, 32>}, {pipeline_mode = #tpu.pipeline_mode<synchronous>, transform_indices = @transform_7, window_bounds = array<i64: 1, 32>}, {pipeline_mode = #tpu.pipeline_mode<synchronous>, transform_indices = @transform_8, window_bounds = array<i64: 1, 1>}, {transform_indices = @transform_9, window_bounds = array<i64: 8, 1>}]} {
    %c0 = arith.constant 0 : index
    %c0_0 = arith.constant 0 : index
    %0 = vector.load %arg1[%c0, %c0_0] : memref<8x3xf32, #tpu.memory_space<vmem>>, vector<8x3xf32>
    %c0_1 = arith.constant 0 : index
    %c0_2 = arith.constant 0 : index
    %1 = vector.load %arg3[%c0_1, %c0_2] : memref<3x32xf32, #tpu.memory_space<vmem>>, vector<3x32xf32>
    %cst = arith.constant dense<0.000000e+00> : vector<8x32xf32>
    %2 = tpu.matmul %0, %1, %cst {dimension_numbers = #tpu.dot_dimension_numbers<[1], [0], [0], [1], [0, 0, 1, 1], [], []>} : vector<8x3xf32>, vector<3x32xf32>, vector<8x32xf32> -> vector<8x32xf32>
    %c0_3 = arith.constant 0 : index
    %c0_4 = arith.constant 0 : index
    %3 = vector.load %arg2[%c0_3, %c0_4] : memref<8x1xf32, #tpu.memory_space<vmem>>, vector<8x1xf32>
    %c0_5 = arith.constant 0 : index
    %c0_6 = arith.constant 0 : index
    %4 = vector.load %arg4[%c0_5, %c0_6] : memref<1x32xf32, #tpu.memory_space<vmem>>, vector<1x32xf32>
    %cst_7 = arith.constant dense<0.000000e+00> : vector<8x32xf32>
    %5 = tpu.matmul %3, %4, %cst_7 {dimension_numbers = #tpu.dot_dimension_numbers<[1], [0], [0], [1], [0, 0, 1, 1], [], []>} : vector<8x1xf32>, vector<1x32xf32>, vector<8x32xf32> -> vector<8x32xf32>
    %6 = arith.addf %2, %5 : vector<8x32xf32>
    %c0_8 = arith.constant 0 : index
    %c0_9 = arith.constant 0 : index
    %7 = vector.load %arg5[%c0_8, %c0_9] : memref<3x32xf32, #tpu.memory_space<vmem>>, vector<1x32xf32>
    %8 = vector.broadcast %7 : vector<1x32xf32> to vector<8x32xf32>
    %9 = arith.addf %6, %8 : vector<8x32xf32>
    %cst_10 = arith.constant 0.000000e+00 : f32
    %10 = vector.broadcast %cst_10 : f32 to vector<8x32xf32>
    %11 = arith.maximumf %9, %10 : vector<8x32xf32>
    %c0_11 = arith.constant 0 : index
    %c0_12 = arith.constant 0 : index
    %12 = vector.load %arg6[%c0_11, %c0_12] : memref<32x32xf32, #tpu.memory_space<vmem>>, vector<32x32xf32>
    %cst_13 = arith.constant dense<0.000000e+00> : vector<8x32xf32>
    %13 = tpu.matmul %11, %12, %cst_13 {dimension_numbers = #tpu.dot_dimension_numbers<[1], [0], [0], [1], [0, 0, 1, 1], [], []>} : vector<8x32xf32>, vector<32x32xf32>, vector<8x32xf32> -> vector<8x32xf32>
    %c1 = arith.constant 1 : index
    %c0_14 = arith.constant 0 : index
    %14 = vector.load %arg5[%c1, %c0_14] : memref<3x32xf32, #tpu.memory_space<vmem>>, vector<1x32xf32>
    %15 = vector.broadcast %14 : vector<1x32xf32> to vector<8x32xf32>
    %16 = arith.addf %13, %15 : vector<8x32xf32>
    %cst_15 = arith.constant 0.000000e+00 : f32
    %17 = vector.broadcast %cst_15 : f32 to vector<8x32xf32>
    %18 = arith.maximumf %16, %17 : vector<8x32xf32>
    %c0_16 = arith.constant 0 : index
    %c0_17 = arith.constant 0 : index
    %19 = vector.load %arg7[%c0_16, %c0_17] : memref<32x32xf32, #tpu.memory_space<vmem>>, vector<32x32xf32>
    %cst_18 = arith.constant dense<0.000000e+00> : vector<8x32xf32>
    %20 = tpu.matmul %18, %19, %cst_18 {dimension_numbers = #tpu.dot_dimension_numbers<[1], [0], [0], [1], [0, 0, 1, 1], [], []>} : vector<8x32xf32>, vector<32x32xf32>, vector<8x32xf32> -> vector<8x32xf32>
    %c2 = arith.constant 2 : index
    %c0_19 = arith.constant 0 : index
    %21 = vector.load %arg5[%c2, %c0_19] : memref<3x32xf32, #tpu.memory_space<vmem>>, vector<1x32xf32>
    %22 = vector.broadcast %21 : vector<1x32xf32> to vector<8x32xf32>
    %23 = arith.addf %20, %22 : vector<8x32xf32>
    %cst_20 = arith.constant 0.000000e+00 : f32
    %24 = vector.broadcast %cst_20 : f32 to vector<8x32xf32>
    %25 = arith.maximumf %23, %24 : vector<8x32xf32>
    %c0_21 = arith.constant 0 : index
    %c0_22 = arith.constant 0 : index
    %26 = vector.load %arg8[%c0_21, %c0_22] : memref<1x32xf32, #tpu.memory_space<vmem>>, vector<1x32xf32>
    %27 = vector.broadcast %26 : vector<1x32xf32> to vector<8x32xf32>
    %28 = arith.mulf %25, %27 : vector<8x32xf32>
    %cst_23 = arith.constant dense<0.000000e+00> : vector<8xf32>
    %29 = vector.multi_reduction <add>, %28, %cst_23 [1] : vector<8x32xf32> to vector<8xf32>
    %30 = vector.shape_cast %29 : vector<8xf32> to vector<8x1xf32>
    %c0_24 = arith.constant 0 : index
    %c0_25 = arith.constant 0 : index
    %31 = vector.load %arg9[%c0_24, %c0_25] : memref<1x1xf32, #tpu.memory_space<vmem>>, vector<1x1xf32>
    %32 = vector.broadcast %31 : vector<1x1xf32> to vector<8x1xf32>
    %33 = arith.addf %30, %32 : vector<8x1xf32>
    %c0_26 = arith.constant 0 : index
    %c0_27 = arith.constant 0 : index
    %34 = vector.load %arg10[%c0_26, %c0_27] : memref<8x1xf32, #tpu.memory_space<vmem>>, vector<8x1xf32>
    tpu.vector_store %arg10[%c0_26, %c0_27], %33 {strides = array<i32>} : memref<8x1xf32, #tpu.memory_space<vmem>>, vector<8x1xf32>,
    return
  }
  func.func @transform_0(%arg0: i32) -> (i32, i32) {
    %c0_i32 = arith.constant 0 : i32
    %c0_i32_0 = arith.constant 0 : i32
    return %arg0, %c0_i32 : i32, i32
  }
  func.func @transform_1(%arg0: i32) -> (i32, i32) {
    %c0_i32 = arith.constant 0 : i32
    %c0_i32_0 = arith.constant 0 : i32
    return %arg0, %c0_i32 : i32, i32
  }
  func.func @transform_2(%arg0: i32) -> (i32, i32) {
    %c0_i32 = arith.constant 0 : i32
    %c0_i32_0 = arith.constant 0 : i32
    %c0_i32_1 = arith.constant 0 : i32
    return %c0_i32, %c0_i32_0 : i32, i32
  }
  func.func @transform_3(%arg0: i32) -> (i32, i32) {
    %c0_i32 = arith.constant 0 : i32
    %c0_i32_0 = arith.constant 0 : i32
    %c0_i32_1 = arith.constant 0 : i32
    return %c0_i32, %c0_i32_0 : i32, i32
  }
  func.func @transform_4(%arg0: i32) -> (i32, i32) {
    %c0_i32 = arith.constant 0 : i32
    %c0_i32_0 = arith.constant 0 : i32
    %c0_i32_1 = arith.constant 0 : i32
    return %c0_i32, %c0_i32_0 : i32, i32
  }
  func.func @transform_5(%arg0: i32) -> (i32, i32) {
    %c0_i32 = arith.constant 0 : i32
    %c0_i32_0 = arith.constant 0 : i32
    %c0_i32_1 = arith.constant 0 : i32
    return %c0_i32, %c0_i32_0 : i32, i32
  }
  func.func @transform_6(%arg0: i32) -> (i32, i32) {
    %c0_i32 = arith.constant 0 : i32
    %c0_i32_0 = arith.constant 0 : i32
    %c0_i32_1 = arith.constant 0 : i32
    return %c0_i32, %c0_i32_0 : i32, i32
  }
  func.func @transform_7(%arg0: i32) -> (i32, i32) {
    %c0_i32 = arith.constant 0 : i32
    %c0_i32_0 = arith.constant 0 : i32
    %c0_i32_1 = arith.constant 0 : i32
    return %c0_i32, %c0_i32_0 : i32, i32
  }
  func.func @transform_8(%arg0: i32) -> (i32, i32) {
    %c0_i32 = arith.constant 0 : i32
    %c0_i32_0 = arith.constant 0 : i32
    %c0_i32_1 = arith.constant 0 : i32
    return %c0_i32, %c0_i32_0 : i32, i32
  }
  func.func @transform_9(%arg0: i32) -> (i32, i32) {
    %c0_i32 = arith.constant 0 : i32
    %c0_i32_0 = arith.constant 0 : i32
    return %arg0, %c0_i32 : i32, i32
  }
}

</mosaic_0001>

<bundles_post_ra>
// kernel: tpu_custom_call.1
= control target key start
LH: loop header
LB: loop body
LE: loop exit
PB: predicated region body
PF: predicated region fallthrough
CT: control target
= control target key end

     0   :  { %s701_s0 = inlined_call_operand.vmem [shape: f32[8,3], index: 0, kind: input, shape index: {}]   ;;  %s702_s1 = inlined_call_operand.vmem [shape: f32[8,1], index: 1, kind: input, shape index: {}]   ;;  %s703_s2 = inlined_call_operand.hbm [shape: f32[3,32], index: 2, kind: input, shape index: {}]   ;;  %s704_s3 = inlined_call_operand.hbm [shape: f32[1,32], index: 3, kind: input, shape index: {}]   ;;  %s705_s4 = inlined_call_operand.hbm [shape: f32[3,32], index: 4, kind: input, shape index: {}]   ;;  %s706_s5 = inlined_call_operand.vmem [shape: f32[32,32], index: 5, kind: input, shape index: {}]   ;;  %s707_s6 = inlined_call_operand.hbm [shape: f32[32,32], index: 6, kind: input, shape index: {}]   ;;  %s708_s7 = inlined_call_operand.vmem [shape: f32[1,32], index: 7, kind: input, shape index: {}]   ;;  %s709_s8 = inlined_call_operand.<no memory space> [shape: f32[1,1], index: 8, kind: input, shape index: {}]   ;;  %s710_s9 = inlined_call_operand.vmem [shape: f32[8,1], index: 9, kind: output, shape index: {}]  }
   0x1   :  { %v14_v0 = vstv %s709_s8 }
   0x2   :  { %15 = vst [vmem:[#allocation2] sm:$0x1] %v14_v0 }
   0x3   :  { %16 = vsyncpa [#allocation4], 0 }
   0x4   :  { %17 = vsyncpa [#allocation6], 0 }
   0x5   :  { %18 = vsyncpa [#allocation9], 0  ;;  %s595_s11 = smov [#allocation5]   ;;  %s596_s13 = smov [#allocation3]  }
   0x6   :  { %s39_s12 = sshll.u32 %s595_s11, 4  ;;  %s29_s14 = sshll.u32 %s596_s13, 4  ;;  %s40_s12 = int_to_ptr.vmem [resolvable:$true] %s39_s12  ;;  %s30_s14 = int_to_ptr.vmem [resolvable:$true] %s29_s14 }
   0x7   :  { %s517_s15 = scalar_lea.vmem %s40_s12, 16  ;;  %s521_s16 = scalar_lea.vmem %s40_s12, 32 }
   0x8   :  { %p518_p0 = scmp.ne.s32.totalorder %s40_s12, %s517_s15  ;;  %p522_p1 = scmp.lt.s32.totalorder %s40_s12, %s40_s12 }
   0x9   :  { %p523_p2 = scmp.lt.s32.totalorder %s521_s16, %s517_s15 }
   0xb   :  { %p524_p3 = por %p523_p2, %p522_p1 }
   0xd   :  { %p525_p4 = pnand %p524_p3, %p518_p0 }
   0xf   :  { %528 = shalt.err (!%p525_p4)
}
  0x10   :  { %42 = dma.hbm_to_vmem [thread:$0]  %s704_s3, 16, %s40_s12, [#allocation6]  }
  0x11   :  { %s537_s18 = scalar_lea.vmem %s30_s14, 64  ;;  %p542_p6 = scmp.lt.s32.totalorder %s30_s14, %s30_s14 }
  0x12   :  { %p538_p5 = scmp.ne.s32.totalorder %s30_s14, %s537_s18  ;;  %p543_p7 = scmp.lt.s32.totalorder %s537_s18, %s537_s18 }
  0x14   :  { %p544_p8 = por %p543_p7, %p542_p6 }
  0x16   :  { %p545_p9 = pnand %p544_p8, %p538_p5 }
  0x18   :  { %548 = shalt.err (!%p545_p9)
}
  0x19   :  { %32 = dma.hbm_to_vmem [thread:$0]  %s703_s2, 64, %s30_s14, [#allocation4]  }
  0x1a   :  { %s597_s21 = smov [#allocation7]   ;;  %s598_s23 = smov [#allocation8]  }
  0x1b   :  { %s49_s22 = sshll.u32 %s597_s21, 4  ;;  %s60_s24 = sshll.u32 %s598_s23, 4  ;;  %s50_s22 = int_to_ptr.vmem [resolvable:$true] %s49_s22  ;;  %s61_s24 = int_to_ptr.vmem [resolvable:$true] %s60_s24 }
  0x1c   :  { %s557_s25 = scalar_lea.vmem %s50_s22, 64  ;;  %p562_p11 = scmp.lt.s32.totalorder %s50_s22, %s50_s22 }
  0x1d   :  { %p558_p10 = scmp.ne.s32.totalorder %s50_s22, %s557_s25  ;;  %p563_p12 = scmp.lt.s32.totalorder %s557_s25, %s557_s25 }
  0x1f   :  { %p564_p13 = por %p563_p12, %p562_p11 }
  0x21   :  { %p565_p0 = pnand %p564_p13, %p558_p10 }
  0x23   :  { %568 = shalt.err (!%p565_p0)
}
  0x24   :  { %52 = dma.hbm_to_vmem [thread:$0]  %s705_s4, 64, %s50_s22, [#allocation6]  }
  0x25   :  { %s577_s27 = scalar_lea.vmem %s61_s24, 512  ;;  %p582_p2 = scmp.lt.s32.totalorder %s61_s24, %s61_s24 }
  0x26   :  { %p578_p1 = scmp.ne.s32.totalorder %s61_s24, %s577_s27  ;;  %p583_p3 = scmp.lt.s32.totalorder %s577_s27, %s577_s27 }
  0x28   :  { %p584_p4 = por %p583_p3, %p582_p2 }
  0x2a   :  { %p585_p5 = pnand %p584_p4, %p578_p1 }
  0x2c   :  { %588 = shalt.err (!%p585_p5)
}
  0x2d   :  { %s599_s2 = smov 128   ;;  %s600_s28 = smov 8  }
  0x2e   :  { %66 = dma.hbm_to_vmem [thread:$0]  %s707_s6, 512, %s61_s24, [#allocation9], %s599_s2, %s599_s2, %s600_s28  }
  0x2f   :  { %589 = dma.done.wait [#allocation4], 64  }
  0x30   :  { %590 = vsyncadd [#allocation4], 4294967232 }
  0x31   :  { %591 = dma.done.wait [#allocation6], 80  }
  0x32   :  { %592 = vsyncadd [#allocation6], 4294967216 }
  0x33   :  { %593 = dma.done.wait [#allocation9], 512  }
  0x34   :  { %594 = vsyncadd [#allocation9], 4294966784  ;;  %v601_v1 = vmov 0.0   ;;  %vm602_vm0 = vmmov 0   ;;  %vm91_vm1 = vcmask 1040384   ;;  %vm169_vm2 = vcmask 1042432  }
  0x35   :  { %469 = vmatprep.subr.mxu0 %v601_v1  ;;  %474 = vmatprep.subr.mxu1 %v601_v1  ;;  %vm87_vm3 = vcmask 7168   ;;  %vm165_vm4 = vcmask 23552   ;;  %v86_v2 = vld [vmem:[#allocation5] sm:$0x1]  ;;  %v84_v3 = vld [vmem:[#allocation3] sm:$0x7] }
  0x36   :  { %471 = vmatprep.mubr.msk.f32.mxu0 %vm602_vm0, %v601_v1  ;;  %476 = vmatprep.mubr.msk.f32.mxu1 %vm602_vm0, %v601_v1  ;;  %v85_v4 = vld [vmem:[%s702_s1] sm:$0xff]  ;;  %v253_v6 = vld [vmem:[%s706_s5 + $0x18] sm:$0xff]  ;;  %v252_v7 = vld [vmem:[%s706_s5 + $0x10] sm:$0xff]  ;;  %vm259_vm5 = vcmask 261120  }
  0x37   :  { %470 = vmatpush3.msk.msra.mxu0 %vm91_vm1, %v86_v2  ;;  %475 = vmatpush3.msk.msra.mxu1 %vm169_vm2, %v84_v3  ;;  %v83_v5 = vld [vmem:[%s701_s0] sm:$0xff]  ;;  %v251_v8 = vld [vmem:[%s706_s5 + $0x8] sm:$0xff]  ;;  %v335_v20 = vld [vmem:[#allocation8 + $0x8] sm:$0xff] }
  0x38   :  { %472 = vmatmul.mubr.msk.f32.vlgmr.msra.gmra.mxu0 %vm87_vm3, %v85_v4  ;;  %477 = vmatmul.mubr.msk.f32.vlgmr.msra.gmra.mxu1 %vm165_vm4, %v83_v5  ;;  %v250_v9 = vld [vmem:[%s706_s5] sm:$0xff]  ;;  %v334_v21 = vld [vmem:[#allocation8] sm:$0xff]  ;;  %v449_v22 = vld [vmem:[#allocation7 + $0x1] ss:$0 sm:$0xff] }
  0x39   :  { %479 = vmatprep.subr.mxu0 %v601_v1  ;;  %487 = vmatprep.mubr.msk.f32.mxu0 %vm602_vm0, %v601_v1  ;;  %v337_v10 = vld [vmem:[#allocation8 + $0x18] sm:$0xff]  ;;  %v336_v19 = vld [vmem:[#allocation8 + $0x10] sm:$0xff] }
  0x3a   :  { %490 = vmatprep.subr.mxu1 %v601_v1  ;;  %498 = vmatprep.mubr.msk.f32.mxu1 %vm602_vm0, %v601_v1  ;;  %v448_v13 = vld [vmem:[#allocation7] ss:$0 sm:$0xff]  ;;  %v451_v27 = vld [vmem:[#allocation7 + $0x2] ss:$0 sm:$0xff]  ;;  %v453_v31 = vld [vmem:[%s708_s7] ss:$0 sm:$0xff] }
  0x3b   :  { %480 = vmatpush3.msra.mxu0 %v253_v6  ;;  %491 = vmatpush3.msra.mxu1 %v337_v10  ;;  %v454_v35 = vld [vmem:[#allocation2] ss:$0 sm:$0xff] }
  0x3c   :  { %481 = vmatprep.subr.mxu0 %v601_v1  ;;  %492 = vmatprep.subr.mxu1 %v601_v1 }
  0x3d   :  { %482 = vmatpush3.msra.mxu0 %v252_v7  ;;  %493 = vmatpush3.msra.mxu1 %v336_v19 }
  0x3e   :  { %483 = vmatprep.subr.mxu0 %v601_v1  ;;  %494 = vmatprep.subr.mxu1 %v601_v1 }
  0x3f   :  { %484 = vmatpush3.msra.mxu0 %v251_v8  ;;  %495 = vmatpush3.msra.mxu1 %v335_v20 }
  0x40   :  { %485 = vmatprep.subr.mxu0 %v601_v1  ;;  %496 = vmatprep.subr.mxu1 %v601_v1 }
  0x41   :  { %486 = vmatpush3.msra.mxu0 %v250_v9  ;;  %497 = vmatpush3.msra.mxu1 %v334_v21 }
  0xf8   :  { %v161_v11 = vpop.f32.mrf.mxu0  ;;  %v239_v12 = vpop.f32.mrf.mxu1 }
  0xf9   :  { %v240_v14 = vadd.f32 %v239_v12, %v161_v11 }
  0xfa   :  { %v473_v15 = vpop.f32.mrf.mxu0  ;;  %v478_v16 = vpop.f32.mrf.mxu1 }
  0xfb   :  { %v248_v17 = vadd.f32 %v448_v13, %v240_v14 }
  0xfd   :  { %v249_v18 = vmax.f32 %v248_v17, 0.0 }
  0xff   :  { %488 = vmatmul.mubr.msk.f32.vlgmr.msra.gmra.mxu0 %vm259_vm5, %v249_v18 }
 0x1bf   :  { %v329_v23 = vpop.f32.mrf.mxu0 }
 0x1c0   :  { %v330_v24 = vadd.f32 %v449_v22, %v329_v23 }
 0x1c1   :  { %v489_v25 = vpop.f32.mrf.mxu0 }
 0x1c2   :  { %v333_v26 = vmax.f32 %v330_v24, 0.0 }
 0x1c4   :  { %499 = vmatmul.mubr.msk.f32.vlgmr.msra.gmra.mxu1 %vm259_vm5, %v333_v26 }
 0x284   :  { %v412_v28 = vpop.f32.mrf.mxu1 }
 0x285   :  { %v413_v29 = vadd.f32 %v451_v27, %v412_v28 }
 0x286   :  { %v500_v30 = vpop.f32.mrf.mxu1 }
 0x287   :  { %v416_v32 = vmax.f32 %v413_v29, 0.0 }
 0x289   :  { %v424_v33 = vmul.f32 %v453_v31, %v416_v32 }
 0x28b   :  { %v425_v34 = vsel %vm259_vm5, %v424_v33, 0.0 }
 0x28c   :  { %426 = vadd.xlane.f32.xlu0 %v425_v34 }
 0x315   :  { %v427_v36 = vpop.xlane.xlu0 %426 }
 0x316   :  { %v435_v37 = vadd.f32 %v454_v35, %v427_v36 }
 0x318   :  { %436 = vst.msk [vmem:[%s710_s9] sm:$0xff] %vm87_vm3, %v435_v37 }
 0x319   :  { %441 = vsyncpa [#allocation4], 1 }
 0x31a   :  { %442 = vsyncpa [#allocation6], 1 }
 0x31b   :  { %443 = vsyncpa [#allocation9], 1 }

</bundles_post_ra>
